<compile_context>
chip_gen: v6e
topology: v6e:2x2x1
jax: 0.10.0
libtpu: 0.0.40
codegen_flags: <defaults>
</compile_context>

<pallas_src>
import functools

import jax
import jax.numpy as jnp
from jax.experimental import pallas as pl
from jax.experimental.pallas import tpu as pltpu


@functools.lru_cache(maxsize=None)
def _probe_pltpu_roll():
    """One-time hardware probe of pltpu.roll (XLU lane rotate).

    Returns (use_pltpu_roll, roll_sign, bf16_ok):
      * use_pltpu_roll: pltpu.roll lowers on this backend (else fall back to jnp.roll).
      * roll_sign: +1 if pltpu.roll follows jnp.roll's sign convention, -1 if opposite.
      * bf16_ok: bf16 lane rotates compile/run (build taps in bf16); otherwise taps stay
        f32 with a single f32->bf16 cast of the patch matrix before the dot.
    """
    def run(dtype):
        def k(x_ref, o_ref):
            o_ref[...] = pltpu.roll(x_ref[...], 1, axis=1)
        x = jnp.broadcast_to(jnp.arange(128, dtype=jnp.float32), (8, 128)).astype(dtype)
        y = pl.pallas_call(k, out_shape=jax.ShapeDtypeStruct((8, 128), dtype))(x)
        return float(jax.block_until_ready(y)[0, 0])

    try:
        v = run(jnp.float32)
    except Exception:                       # pltpu.roll unavailable -> jnp.roll fallback
        return False, 1, True
    roll_sign = -1 if v == 1.0 else 1       # jnp.roll(x, 1) puts the last element first
    try:
        bf16_ok = run(jnp.bfloat16) in (1.0, 127.0)
    except Exception:
        bf16_ok = False
    return True, roll_sign, bf16_ok


def conv_relu_kernel(x_ref, m_ref, w_ref, b_ref, o_ref, *, W, HW,
                     roll_sign, use_pltpu_roll):
    # x_ref : (nb, Cin_pad, HW)     f32   nb batch images, NCHW flattened, Cin padded to 8
    # m_ref : (8, HW)               bf16/f32 border-validity mask per non-center tap
    # w_ref : (Cout, 9*Cin_pad)     bf16  3x3 taps folded into the contraction dim
    # b_ref : (Cout, 1)             f32
    # o_ref : (nb, Cout, HW)
    masks = m_ref[...]                       # loaded once, shared across the nb images
    w = w_ref[...]
    b = b_ref[...]
    nb = x_ref.shape[0]

    for bi in range(nb):                     # unrolled: several images per grid step
        x = x_ref[bi].astype(masks.dtype)    # single f32->bf16 cast of the whole image
        parts = []
        mi = 0
        for dh in (-1, 0, 1):
            for dw in (-1, 0, 1):
                shift = dh * W + dw          # flattened tap offset
                if shift == 0:
                    parts.append(x)
                    continue
                # want y[:, p] == x[:, p + shift]; express as a non-negative rotate.
                amt = (-shift if roll_sign > 0 else shift) % HW
                if use_pltpu_roll:
                    y = pltpu.roll(x, amt, axis=1)        # XLU lane rotate (off VALU/MXU)
                else:
                    y = jnp.roll(x, amt, axis=1)          # fallback path
                parts.append(y * masks[mi:mi + 1, :])     # conv zero-padding via mask
                mi += 1
        # 8-row-aligned groups -> pure-layout stack; astype is a no-op on the bf16 path.
        patches = jnp.concatenate(parts, axis=0).astype(jnp.bfloat16)   # (9*Cin_pad, HW)
        acc = jnp.dot(w, patches, preferred_element_type=jnp.float32)   # one MXU matmul
        o_ref[bi] = jnp.maximum(acc + b, 0.0).astype(o_ref.dtype)       # bias + ReLU


@functools.partial(jax.jit, static_argnames=("roll_sign", "use_pltpu_roll", "bf16_taps"))
def _image_conv_relu(x_nchw, weight, bias, *, roll_sign, use_pltpu_roll, bf16_taps):
    N, Cin, H, W = x_nchw.shape
    Cout = weight.shape[0]
    HW = H * W                               # lane axis; a multiple of 128 at these sizes
    cin_pad = -(-Cin // 8) * 8               # sublane-aligned tap groups
    tap_dtype = jnp.bfloat16 if bf16_taps else jnp.float32

    # Free reshape NCHW -> (N, Cin, H*W); zero-pad Cin to the 8-aligned group size.
    x2 = x_nchw.reshape(N, Cin, HW)
    if cin_pad != Cin:
        x2 = jnp.pad(x2, ((0, 0), (0, cin_pad - Cin), (0, 0)))

    # Weight repack (tiny): (Cout,Cin,3,3) -> (Cout, 9*Cin_pad), taps in (kh,kw,cin)
    # order to match the kernel's patch stacking; padded channels get zero columns.
    w_t = jnp.transpose(weight, (0, 2, 3, 1))              # (Cout, 3, 3, Cin)
    if cin_pad != Cin:
        w_t = jnp.pad(w_t, ((0, 0), (0, 0), (0, 0), (0, cin_pad - Cin)))
    w2 = w_t.reshape(Cout, 9 * cin_pad).astype(jnp.bfloat16)
    b2 = bias.reshape(Cout, 1).astype(jnp.float32)

    # Precomputed border masks: one (1, HW) row per non-center tap, same (dh,dw) order
    # as the kernel loop.  Constant block index -> DMA'd once across the grid.
    r = jnp.arange(HW, dtype=jnp.int32) // W
    c = jnp.arange(HW, dtype=jnp.int32) % W
    rows = []
    for dh in (-1, 0, 1):
        for dw in (-1, 0, 1):
            if dh == 0 and dw == 0:
                continue
            ok = jnp.ones((HW,), dtype=jnp.bool_)
            if dh == -1:
                ok = ok & (r >= 1)
            elif dh == 1:
                ok = ok & (r <= H - 2)
            if dw == -1:
                ok = ok & (c >= 1)
            elif dw == 1:
                ok = ok & (c <= W - 2)
            rows.append(ok)
    masks = jnp.stack(rows, axis=0).astype(tap_dtype)      # (8, HW)

    # Batch-stack images per grid step to amortize the fixed per-step overhead; keep the
    # per-step working set small (production sizes should move to H*W row-tiling instead).
    bytes_per_img = HW * (cin_pad * 4 + 9 * cin_pad * 2 + Cout * 8)
    nb = 1
    for cand in (8, 4, 2):
        if N % cand == 0 and cand * bytes_per_img <= (4 << 20):
            nb = cand
            break

    kernel = functools.partial(conv_relu_kernel, W=W, HW=HW,
                               roll_sign=roll_sign, use_pltpu_roll=use_pltpu_roll)

    out = pl.pallas_call(
        kernel,
        out_shape=jax.ShapeDtypeStruct((N, Cout, HW), x_nchw.dtype),
        grid_spec=pltpu.PrefetchScalarGridSpec(
            num_scalar_prefetch=0,
            grid=(N // nb,),
            in_specs=[
                pl.BlockSpec((nb, cin_pad, HW), lambda i: (i, 0, 0)),
                pl.BlockSpec((8, HW), lambda i: (0, 0)),
                pl.BlockSpec((Cout, 9 * cin_pad), lambda i: (0, 0)),
                pl.BlockSpec((Cout, 1), lambda i: (0, 0)),
            ],
            out_specs=pl.BlockSpec((nb, Cout, HW), lambda i: (i, 0, 0)),
        ),
        compiler_params=pltpu.CompilerParams(
            dimension_semantics=("parallel",),       # shardable across v7x's 2 TCs
            vmem_limit_bytes=32 * 1024 * 1024,
        ),
    )(x2, masks, w2, b2)

    return out.reshape(N, Cout, H, W)                # free reshape back to NCHW


def image_conv_relu(x_nchw, weight, bias):
    """Conv2d(Cin, Cout, kernel=3, stride=1, padding=1) + ReLU on NCHW input."""
    use_pltpu_roll, roll_sign, bf16_ok = _probe_pltpu_roll()
    return _image_conv_relu(x_nchw, weight, bias,
                            roll_sign=roll_sign,
                            use_pltpu_roll=use_pltpu_roll,
                            bf16_taps=bf16_ok or not use_pltpu_roll)


def _reference(x_nchw, weight, bias):
    out = jax.lax.conv_general_dilated(
        x_nchw, weight,
        window_strides=(1, 1), padding=((1, 1), (1, 1)),
        dimension_numbers=("NCHW", "OIHW", "NCHW"),
    )
    return jnp.maximum(out + bias.reshape(1, -1, 1, 1), 0.0)


if __name__ == "__main__":
    key = jax.random.PRNGKey(0)
    N, Cin, Cout, H, W = 2, 4, 8, 16, 16

    kx, kw, kb = jax.random.split(key, 3)
    x = jax.random.normal(kx, (N, Cin, H, W), dtype=jnp.float32)
    # Deterministic synthetic parameters (PyTorch Conv2d shapes: (Cout,Cin,3,3), (Cout,)).
    weight = 0.1 * jax.random.normal(kw, (Cout, Cin, 3, 3), dtype=jnp.float32)
    bias = 0.1 * jax.random.normal(kb, (Cout,), dtype=jnp.float32)

    out = jax.block_until_ready(image_conv_relu(x, weight, bias))

    ref = _reference(x, weight, bias)
    assert out.shape == (N, Cout, H, W)
    err = float(jnp.max(jnp.abs(out - ref)))
    assert jnp.allclose(out, ref, atol=2e-2, rtol=2e-2), err

    print("KERNEL_OK")
</pallas_src>

<mosaic_0001>
module attributes {stable_mosaic.version = 11 : i64} {
  func.func @k(%arg0: memref<8x128xf32, #tpu.memory_space<vmem>>, %arg1: memref<8x128xf32, #tpu.memory_space<vmem>>) attributes {dimension_semantics = [], scalar_prefetch = 0 : i64, scratch_operands = 0 : i64, tpu.core_type = #tpu.core_type<tc>} {
    %c0 = arith.constant 0 : index
    %c0_0 = arith.constant 0 : index
    %0 = vector.load %arg0[%c0, %c0_0] : memref<8x128xf32, #tpu.memory_space<vmem>>, vector<8x128xf32>
    %c1_i32 = arith.constant 1 : i32
    %1 = tpu.dynamic_rotate %0 by %c1_i32 dim 1 : vector<8x128xf32>, i32 -> vector<8x128xf32>
    %c0_1 = arith.constant 0 : index
    %c0_2 = arith.constant 0 : index
    %2 = vector.load %arg1[%c0_1, %c0_2] : memref<8x128xf32, #tpu.memory_space<vmem>>, vector<8x128xf32>
    tpu.vector_store %arg1[%c0_1, %c0_2], %1 {strides = array<i32>} : memref<8x128xf32, #tpu.memory_space<vmem>>, vector<8x128xf32>,
    return
  }
}

module attributes {stable_mosaic.version = 11 : i64} {
  func.func @conv_relu_kernel(%arg0: i32, %arg1: memref<2x8x256xf32, #tpu.memory_space<vmem>>, %arg2: memref<8x256xbf16, #tpu.memory_space<vmem>>, %arg3: memref<8x72xbf16, #tpu.memory_space<vmem>>, %arg4: memref<8x1xf32, #tpu.memory_space<vmem>>, %arg5: memref<2x8x256xf32, #tpu.memory_space<vmem>>) attributes {dimension_semantics = [#tpu.dimension_semantics<parallel>], iteration_bounds = array<i64: 1>, scalar_prefetch = 0 : i64, scratch_operands = 0 : i64, tpu.core_type = #tpu.core_type<tc>, window_params = [{transform_indices = @transform_0, window_bounds = array<i64: 2, 8, 256>}, {pipeline_mode = #tpu.pipeline_mode<synchronous>, transform_indices = @transform_1, window_bounds = array<i64: 8, 256>}, {pipeline_mode = #tpu.pipeline_mode<synchronous>, transform_indices = @transform_2, window_bounds = array<i64: 8, 72>}, {pipeline_mode = #tpu.pipeline_mode<synchronous>, transform_indices = @transform_3, window_bounds = array<i64: 8, 1>}, {transform_indices = @transform_4, window_bounds = array<i64: 2, 8, 256>}]} {
    %c0 = arith.constant 0 : index
    %c0_0 = arith.constant 0 : index
    %0 = vector.load %arg2[%c0, %c0_0] : memref<8x256xbf16, #tpu.memory_space<vmem>>, vector<8x256xbf16>
    %c0_1 = arith.constant 0 : index
    %c0_2 = arith.constant 0 : index
    %1 = vector.load %arg3[%c0_1, %c0_2] : memref<8x72xbf16, #tpu.memory_space<vmem>>, vector<8x72xbf16>
    %c0_3 = arith.constant 0 : index
    %c0_4 = arith.constant 0 : index
    %2 = vector.load %arg4[%c0_3, %c0_4] : memref<8x1xf32, #tpu.memory_space<vmem>>, vector<8x1xf32>
    %c0_5 = arith.constant 0 : index
    %c0_6 = arith.constant 0 : index
    %c0_7 = arith.constant 0 : index
    %3 = vector.load %arg1[%c0_5, %c0_6, %c0_7] : memref<2x8x256xf32, #tpu.memory_space<vmem>>, vector<1x8x256xf32>
    %4 = vector.shape_cast %3 : vector<1x8x256xf32> to vector<8x256xf32>
    %5 = arith.truncf %4 : vector<8x256xf32> to vector<8x256xbf16>
    %6 = vector.extract_strided_slice %5 {offsets = [0, 239], sizes = [8, 17], strides = [1, 1]} : vector<8x256xbf16> to vector<8x17xbf16>
    %7 = vector.extract_strided_slice %5 {offsets = [0, 0], sizes = [8, 239], strides = [1, 1]} : vector<8x256xbf16> to vector<8x239xbf16>
    %8 = tpu.concatenate %6, %7 in 1 : vector<8x17xbf16>, vector<8x239xbf16> -> vector<8x256xbf16>
    %9 = vector.extract_strided_slice %0 {offsets = [0, 0], sizes = [1, 256], strides = [1, 1]} : vector<8x256xbf16> to vector<1x256xbf16>
    %10 = vector.broadcast %9 : vector<1x256xbf16> to vector<8x256xbf16>
    %11 = arith.mulf %8, %10 : vector<8x256xbf16>
    %12 = vector.extract_strided_slice %5 {offsets = [0, 240], sizes = [8, 16], strides = [1, 1]} : vector<8x256xbf16> to vector<8x16xbf16>
    %13 = vector.extract_strided_slice %5 {offsets = [0, 0], sizes = [8, 240], strides = [1, 1]} : vector<8x256xbf16> to vector<8x240xbf16>
    %14 = tpu.concatenate %12, %13 in 1 : vector<8x16xbf16>, vector<8x240xbf16> -> vector<8x256xbf16>
    %15 = vector.extract_strided_slice %0 {offsets = [1, 0], sizes = [1, 256], strides = [1, 1]} : vector<8x256xbf16> to vector<1x256xbf16>
    %16 = vector.broadcast %15 : vector<1x256xbf16> to vector<8x256xbf16>
    %17 = arith.mulf %14, %16 : vector<8x256xbf16>
    %18 = vector.extract_strided_slice %5 {offsets = [0, 241], sizes = [8, 15], strides = [1, 1]} : vector<8x256xbf16> to vector<8x15xbf16>
    %19 = vector.extract_strided_slice %5 {offsets = [0, 0], sizes = [8, 241], strides = [1, 1]} : vector<8x256xbf16> to vector<8x241xbf16>
    %20 = tpu.concatenate %18, %19 in 1 : vector<8x15xbf16>, vector<8x241xbf16> -> vector<8x256xbf16>
    %21 = vector.extract_strided_slice %0 {offsets = [2, 0], sizes = [1, 256], strides = [1, 1]} : vector<8x256xbf16> to vector<1x256xbf16>
    %22 = vector.broadcast %21 : vector<1x256xbf16> to vector<8x256xbf16>
    %23 = arith.mulf %20, %22 : vector<8x256xbf16>
    %24 = vector.extract_strided_slice %5 {offsets = [0, 255], sizes = [8, 1], strides = [1, 1]} : vector<8x256xbf16> to vector<8x1xbf16>
    %25 = vector.extract_strided_slice %5 {offsets = [0, 0], sizes = [8, 255], strides = [1, 1]} : vector<8x256xbf16> to vector<8x255xbf16>
    %26 = tpu.concatenate %24, %25 in 1 : vector<8x1xbf16>, vector<8x255xbf16> -> vector<8x256xbf16>
    %27 = vector.extract_strided_slice %0 {offsets = [3, 0], sizes = [1, 256], strides = [1, 1]} : vector<8x256xbf16> to vector<1x256xbf16>
    %28 = vector.broadcast %27 : vector<1x256xbf16> to vector<8x256xbf16>
    %29 = arith.mulf %26, %28 : vector<8x256xbf16>
    %30 = vector.extract_strided_slice %5 {offsets = [0, 1], sizes = [8, 255], strides = [1, 1]} : vector<8x256xbf16> to vector<8x255xbf16>
    %31 = vector.extract_strided_slice %5 {offsets = [0, 0], sizes = [8, 1], strides = [1, 1]} : vector<8x256xbf16> to vector<8x1xbf16>
    %32 = tpu.concatenate %30, %31 in 1 : vector<8x255xbf16>, vector<8x1xbf16> -> vector<8x256xbf16>
    %33 = vector.extract_strided_slice %0 {offsets = [4, 0], sizes = [1, 256], strides = [1, 1]} : vector<8x256xbf16> to vector<1x256xbf16>
    %34 = vector.broadcast %33 : vector<1x256xbf16> to vector<8x256xbf16>
    %35 = arith.mulf %32, %34 : vector<8x256xbf16>
    %36 = vector.extract_strided_slice %5 {offsets = [0, 15], sizes = [8, 241], strides = [1, 1]} : vector<8x256xbf16> to vector<8x241xbf16>
    %37 = vector.extract_strided_slice %5 {offsets = [0, 0], sizes = [8, 15], strides = [1, 1]} : vector<8x256xbf16> to vector<8x15xbf16>
    %38 = tpu.concatenate %36, %37 in 1 : vector<8x241xbf16>, vector<8x15xbf16> -> vector<8x256xbf16>
    %39 = vector.extract_strided_slice %0 {offsets = [5, 0], sizes = [1, 256], strides = [1, 1]} : vector<8x256xbf16> to vector<1x256xbf16>
    %40 = vector.broadcast %39 : vector<1x256xbf16> to vector<8x256xbf16>
    %41 = arith.mulf %38, %40 : vector<8x256xbf16>
    %42 = vector.extract_strided_slice %5 {offsets = [0, 16], sizes = [8, 240], strides = [1, 1]} : vector<8x256xbf16> to vector<8x240xbf16>
    %43 = vector.extract_strided_slice %5 {offsets = [0, 0], sizes = [8, 16], strides = [1, 1]} : vector<8x256xbf16> to vector<8x16xbf16>
    %44 = tpu.concatenate %42, %43 in 1 : vector<8x240xbf16>, vector<8x16xbf16> -> vector<8x256xbf16>
    %45 = vector.extract_strided_slice %0 {offsets = [6, 0], sizes = [1, 256], strides = [1, 1]} : vector<8x256xbf16> to vector<1x256xbf16>
    %46 = vector.broadcast %45 : vector<1x256xbf16> to vector<8x256xbf16>
    %47 = arith.mulf %44, %46 : vector<8x256xbf16>
    %48 = vector.extract_strided_slice %5 {offsets = [0, 17], sizes = [8, 239], strides = [1, 1]} : vector<8x256xbf16> to vector<8x239xbf16>
    %49 = vector.extract_strided_slice %5 {offsets = [0, 0], sizes = [8, 17], strides = [1, 1]} : vector<8x256xbf16> to vector<8x17xbf16>
    %50 = tpu.concatenate %48, %49 in 1 : vector<8x239xbf16>, vector<8x17xbf16> -> vector<8x256xbf16>
    %51 = vector.extract_strided_slice %0 {offsets = [7, 0], sizes = [1, 256], strides = [1, 1]} : vector<8x256xbf16> to vector<1x256xbf16>
    %52 = vector.broadcast %51 : vector<1x256xbf16> to vector<8x256xbf16>
    %53 = arith.mulf %50, %52 : vector<8x256xbf16>
    %54 = tpu.concatenate %11, %17, %23, %29, %5, %35, %41, %47, %53 in 0 : vector<8x256xbf16>, vector<8x256xbf16>, vector<8x256xbf16>, vector<8x256xbf16>, vector<8x256xbf16>, vector<8x256xbf16>, vector<8x256xbf16>, vector<8x256xbf16>, vector<8x256xbf16> -> vector<72x256xbf16>
    %cst = arith.constant dense<0.000000e+00> : vector<8x256xf32>
    %55 = tpu.matmul %1, %54, %cst {dimension_numbers = #tpu.dot_dimension_numbers<[1], [0], [0], [1], [0, 0, 1, 1], [], []>} : vector<8x72xbf16>, vector<72x256xbf16>, vector<8x256xf32> -> vector<8x256xf32>
    %56 = vector.broadcast %2 : vector<8x1xf32> to vector<8x256xf32>
    %57 = arith.addf %55, %56 : vector<8x256xf32>
    %cst_8 = arith.constant 0.000000e+00 : f32
    %58 = vector.broadcast %cst_8 : f32 to vector<8x256xf32>
    %59 = arith.maximumf %57, %58 : vector<8x256xf32>
    %c0_9 = arith.constant 0 : index
    %c0_10 = arith.constant 0 : index
    %c0_11 = arith.constant 0 : index
    %60 = vector.load %arg5[%c0_9, %c0_10, %c0_11] : memref<2x8x256xf32, #tpu.memory_space<vmem>>, vector<1x8x256xf32>
    %61 = vector.shape_cast %60 : vector<1x8x256xf32> to vector<8x256xf32>
    %62 = vector.shape_cast %59 : vector<8x256xf32> to vector<1x8x256xf32>
    tpu.vector_store %arg5[%c0_9, %c0_10, %c0_11], %62 {strides = array<i32>} : memref<2x8x256xf32, #tpu.memory_space<vmem>>, vector<1x8x256xf32>,
    %c1 = arith.constant 1 : index
    %c0_12 = arith.constant 0 : index
    %c0_13 = arith.constant 0 : index
    %63 = vector.load %arg1[%c1, %c0_12, %c0_13] : memref<2x8x256xf32, #tpu.memory_space<vmem>>, vector<1x8x256xf32>
    %64 = vector.shape_cast %63 : vector<1x8x256xf32> to vector<8x256xf32>
    %65 = arith.truncf %64 : vector<8x256xf32> to vector<8x256xbf16>
    %66 = vector.extract_strided_slice %65 {offsets = [0, 239], sizes = [8, 17], strides = [1, 1]} : vector<8x256xbf16> to vector<8x17xbf16>
    %67 = vector.extract_strided_slice %65 {offsets = [0, 0], sizes = [8, 239], strides = [1, 1]} : vector<8x256xbf16> to vector<8x239xbf16>
    %68 = tpu.concatenate %66, %67 in 1 : vector<8x17xbf16>, vector<8x239xbf16> -> vector<8x256xbf16>
    %69 = vector.extract_strided_slice %0 {offsets = [0, 0], sizes = [1, 256], strides = [1, 1]} : vector<8x256xbf16> to vector<1x256xbf16>
    %70 = vector.broadcast %69 : vector<1x256xbf16> to vector<8x256xbf16>
    %71 = arith.mulf %68, %70 : vector<8x256xbf16>
    %72 = vector.extract_strided_slice %65 {offsets = [0, 240], sizes = [8, 16], strides = [1, 1]} : vector<8x256xbf16> to vector<8x16xbf16>
    %73 = vector.extract_strided_slice %65 {offsets = [0, 0], sizes = [8, 240], strides = [1, 1]} : vector<8x256xbf16> to vector<8x240xbf16>
    %74 = tpu.concatenate %72, %73 in 1 : vector<8x16xbf16>, vector<8x240xbf16> -> vector<8x256xbf16>
    %75 = vector.extract_strided_slice %0 {offsets = [1, 0], sizes = [1, 256], strides = [1, 1]} : vector<8x256xbf16> to vector<1x256xbf16>
    %76 = vector.broadcast %75 : vector<1x256xbf16> to vector<8x256xbf16>
    %77 = arith.mulf %74, %76 : vector<8x256xbf16>
    %78 = vector.extract_strided_slice %65 {offsets = [0, 241], sizes = [8, 15], strides = [1, 1]} : vector<8x256xbf16> to vector<8x15xbf16>
    %79 = vector.extract_strided_slice %65 {offsets = [0, 0], sizes = [8, 241], strides = [1, 1]} : vector<8x256xbf16> to vector<8x241xbf16>
    %80 = tpu.concatenate %78, %79 in 1 : vector<8x15xbf16>, vector<8x241xbf16> -> vector<8x256xbf16>
    %81 = vector.extract_strided_slice %0 {offsets = [2, 0], sizes = [1, 256], strides = [1, 1]} : vector<8x256xbf16> to vector<1x256xbf16>
    %82 = vector.broadcast %81 : vector<1x256xbf16> to vector<8x256xbf16>
    %83 = arith.mulf %80, %82 : vector<8x256xbf16>
    %84 = vector.extract_strided_slice %65 {offsets = [0, 255], sizes = [8, 1], strides = [1, 1]} : vector<8x256xbf16> to vector<8x1xbf16>
    %85 = vector.extract_strided_slice %65 {offsets = [0, 0], sizes = [8, 255], strides = [1, 1]} : vector<8x256xbf16> to vector<8x255xbf16>
    %86 = tpu.concatenate %84, %85 in 1 : vector<8x1xbf16>, vector<8x255xbf16> -> vector<8x256xbf16>
    %87 = vector.extract_strided_slice %0 {offsets = [3, 0], sizes = [1, 256], strides = [1, 1]} : vector<8x256xbf16> to vector<1x256xbf16>
    %88 = vector.broadcast %87 : vector<1x256xbf16> to vector<8x256xbf16>
    %89 = arith.mulf %86, %88 : vector<8x256xbf16>
    %90 = vector.extract_strided_slice %65 {offsets = [0, 1], sizes = [8, 255], strides = [1, 1]} : vector<8x256xbf16> to vector<8x255xbf16>
    %91 = vector.extract_strided_slice %65 {offsets = [0, 0], sizes = [8, 1], strides = [1, 1]} : vector<8x256xbf16> to vector<8x1xbf16>
    %92 = tpu.concatenate %90, %91 in 1 : vector<8x255xbf16>, vector<8x1xbf16> -> vector<8x256xbf16>
    %93 = vector.extract_strided_slice %0 {offsets = [4, 0], sizes = [1, 256], strides = [1, 1]} : vector<8x256xbf16> to vector<1x256xbf16>
    %94 = vector.broadcast %93 : vector<1x256xbf16> to vector<8x256xbf16>
    %95 = arith.mulf %92, %94 : vector<8x256xbf16>
    %96 = vector.extract_strided_slice %65 {offsets = [0, 15], sizes = [8, 241], strides = [1, 1]} : vector<8x256xbf16> to vector<8x241xbf16>
    %97 = vector.extract_strided_slice %65 {offsets = [0, 0], sizes = [8, 15], strides = [1, 1]} : vector<8x256xbf16> to vector<8x15xbf16>
    %98 = tpu.concatenate %96, %97 in 1 : vector<8x241xbf16>, vector<8x15xbf16> -> vector<8x256xbf16>
    %99 = vector.extract_strided_slice %0 {offsets = [5, 0], sizes = [1, 256], strides = [1, 1]} : vector<8x256xbf16> to vector<1x256xbf16>
    %100 = vector.broadcast %99 : vector<1x256xbf16> to vector<8x256xbf16>
    %101 = arith.mulf %98, %100 : vector<8x256xbf16>
    %102 = vector.extract_strided_slice %65 {offsets = [0, 16], sizes = [8, 240], strides = [1, 1]} : vector<8x256xbf16> to vector<8x240xbf16>
    %103 = vector.extract_strided_slice %65 {offsets = [0, 0], sizes = [8, 16], strides = [1, 1]} : vector<8x256xbf16> to vector<8x16xbf16>
    %104 = tpu.concatenate %102, %103 in 1 : vector<8x240xbf16>, vector<8x16xbf16> -> vector<8x256xbf16>
    %105 = vector.extract_strided_slice %0 {offsets = [6, 0], sizes = [1, 256], strides = [1, 1]} : vector<8x256xbf16> to vector<1x256xbf16>
    %106 = vector.broadcast %105 : vector<1x256xbf16> to vector<8x256xbf16>
    %107 = arith.mulf %104, %106 : vector<8x256xbf16>
    %108 = vector.extract_strided_slice %65 {offsets = [0, 17], sizes = [8, 239], strides = [1, 1]} : vector<8x256xbf16> to vector<8x239xbf16>
    %109 = vector.extract_strided_slice %65 {offsets = [0, 0], sizes = [8, 17], strides = [1, 1]} : vector<8x256xbf16> to vector<8x17xbf16>
    %110 = tpu.concatenate %108, %109 in 1 : vector<8x239xbf16>, vector<8x17xbf16> -> vector<8x256xbf16>
    %111 = vector.extract_strided_slice %0 {offsets = [7, 0], sizes = [1, 256], strides = [1, 1]} : vector<8x256xbf16> to vector<1x256xbf16>
    %112 = vector.broadcast %111 : vector<1x256xbf16> to vector<8x256xbf16>
    %113 = arith.mulf %110, %112 : vector<8x256xbf16>
    %114 = tpu.concatenate %71, %77, %83, %89, %65, %95, %101, %107, %113 in 0 : vector<8x256xbf16>, vector<8x256xbf16>, vector<8x256xbf16>, vector<8x256xbf16>, vector<8x256xbf16>, vector<8x256xbf16>, vector<8x256xbf16>, vector<8x256xbf16>, vector<8x256xbf16> -> vector<72x256xbf16>
    %cst_14 = arith.constant dense<0.000000e+00> : vector<8x256xf32>
    %115 = tpu.matmul %1, %114, %cst_14 {dimension_numbers = #tpu.dot_dimension_numbers<[1], [0], [0], [1], [0, 0, 1, 1], [], []>} : vector<8x72xbf16>, vector<72x256xbf16>, vector<8x256xf32> -> vector<8x256xf32>
    %116 = vector.broadcast %2 : vector<8x1xf32> to vector<8x256xf32>
    %117 = arith.addf %115, %116 : vector<8x256xf32>
    %cst_15 = arith.constant 0.000000e+00 : f32
    %118 = vector.broadcast %cst_15 : f32 to vector<8x256xf32>
    %119 = arith.maximumf %117, %118 : vector<8x256xf32>
    %c1_16 = arith.constant 1 : index
    %c0_17 = arith.constant 0 : index
    %c0_18 = arith.constant 0 : index
    %120 = vector.load %arg5[%c1_16, %c0_17, %c0_18] : memref<2x8x256xf32, #tpu.memory_space<vmem>>, vector<1x8x256xf32>
    %121 = vector.shape_cast %120 : vector<1x8x256xf32> to vector<8x256xf32>
    %122 = vector.shape_cast %119 : vector<8x256xf32> to vector<1x8x256xf32>
    tpu.vector_store %arg5[%c1_16, %c0_17, %c0_18], %122 {strides = array<i32>} : memref<2x8x256xf32, #tpu.memory_space<vmem>>, vector<1x8x256xf32>,
    return
  }
  func.func @transform_0(%arg0: i32) -> (i32, i32, i32) {
    %c0_i32 = arith.constant 0 : i32
    %c0_i32_0 = arith.constant 0 : i32
    %c0_i32_1 = arith.constant 0 : i32
    return %arg0, %c0_i32, %c0_i32_0 : i32, i32, i32
  }
  func.func @transform_1(%arg0: i32) -> (i32, i32) {
    %c0_i32 = arith.constant 0 : i32
    %c0_i32_0 = arith.constant 0 : i32
    %c0_i32_1 = arith.constant 0 : i32
    return %c0_i32, %c0_i32_0 : i32, i32
  }
  func.func @transform_2(%arg0: i32) -> (i32, i32) {
    %c0_i32 = arith.constant 0 : i32
    %c0_i32_0 = arith.constant 0 : i32
    %c0_i32_1 = arith.constant 0 : i32
    return %c0_i32, %c0_i32_0 : i32, i32
  }
  func.func @transform_3(%arg0: i32) -> (i32, i32) {
    %c0_i32 = arith.constant 0 : i32
    %c0_i32_0 = arith.constant 0 : i32
    %c0_i32_1 = arith.constant 0 : i32
    return %c0_i32, %c0_i32_0 : i32, i32
  }
  func.func @transform_4(%arg0: i32) -> (i32, i32, i32) {
    %c0_i32 = arith.constant 0 : i32
    %c0_i32_0 = arith.constant 0 : i32
    %c0_i32_1 = arith.constant 0 : i32
    return %arg0, %c0_i32, %c0_i32_0 : i32, i32, i32
  }
}

</mosaic_0001>

<bundles_post_ra>
// kernel: tpu_custom_call.1
= control target key start
LH: loop header
LB: loop body
LE: loop exit
PB: predicated region body
PF: predicated region fallthrough
CT: control target
= control target key end

     0   :  { %6 = vsyncpa [#allocation3], 0  ;;  %s106_s0 = inlined_call_operand.hbm [shape: f32[8,128], index: 0, kind: input, shape index: {}]   ;;  %s107_s1 = inlined_call_operand.hbm [shape: f32[8,128], index: 1, kind: output, shape index: {}]  }
   0x1   :  { %7 = vsyncpa [#allocation4], 0  ;;  %s87_s6 = smov [#allocation2]  }
   0x2   :  { %s14_s7 = sshll.u32 %s87_s6, 4  ;;  %s15_s7 = int_to_ptr.vmem [resolvable:$true] %s14_s7 }
   0x3   :  { %s51_s8 = scalar_lea.vmem %s15_s7, 128  ;;  %p56_p1 = scmp.lt.s32.totalorder %s15_s7, %s15_s7 }
   0x4   :  { %p52_p0 = scmp.ne.s32.totalorder %s15_s7, %s51_s8  ;;  %p57_p2 = scmp.lt.s32.totalorder %s51_s8, %s51_s8 }
   0x6   :  { %p58_p3 = por %p57_p2, %p56_p1 }
   0x8   :  { %p59_p4 = pnand %p58_p3, %p52_p0 }
   0xa   :  { %62 = shalt.err (!%p59_p4)
}
   0xb   :  { %17 = dma.hbm_to_vmem [thread:$0]  %s106_s0, 128, %s15_s7, [#allocation3]  }
   0xc   :  { %83 = dma.done.wait [#allocation3], 128  }
   0xd   :  { %84 = vsyncadd [#allocation3], 4294967168  ;;  %v21_v0 = vld [vmem:[#allocation2] sm:$0xff]  ;;  %s88_s11 = smov 1   ;;  %s89_s12 = smov [#allocation5]  }
   0xe   :  { %22 = vrot.lane.b32.xlu0 %v21_v0, %s88_s11  ;;  %s31_s13 = sshll.u32 %s89_s12, 4  ;;  %s32_s13 = int_to_ptr.vmem [resolvable:$true] %s31_s13 }
   0xf   :  { %s63_s14 = scalar_lea.vmem %s32_s13, 128  ;;  %p68_p6 = scmp.lt.s32.totalorder %s32_s13, %s32_s13 }
  0x10   :  { %p64_p5 = scmp.ne.s32.totalorder %s32_s13, %s63_s14  ;;  %p69_p7 = scmp.lt.s32.totalorder %s63_s14, %s63_s14 }
  0x12   :  { %p70_p8 = por %p69_p7, %p68_p6 }
  0x14   :  { %p71_p9 = pnand %p70_p8, %p64_p5 }
  0x80   :  { %v23_v1 = vpop.permute.xlu0 %22 }
  0x81   :  { %24 = vst [vmem:[#allocation5] sm:$0xff] %v23_v1 }
  0x82   :  { %74 = shalt.err (!%p71_p9)
}
  0x83   :  { %34 = dma.vmem_to_hbm [thread:$0]  %s32_s13, 128, %s107_s1, [#allocation4]  }
  0x84   :  { %85 = dma.done.wait [#allocation4], 128  }
  0x85   :  { %86 = vsyncadd [#allocation4], 4294967168 }
  0x86   :  { %38 = vsyncpa [#allocation3], 1 }
  0x87   :  { %39 = vsyncpa [#allocation4], 1 }

// kernel: _image_conv_relu.1
= control target key start
LH: loop header
LB: loop body
LE: loop exit
PB: predicated region body
PF: predicated region fallthrough
CT: control target
= control target key end

     0   :  { %s558_s23 = smov 111   ;;  %s559_s24 = smov 112   ;;  %v565_v8 = vmov 0   ;;  %v47_v12 = vlaneseq  ;;  %vm202_vm0 = vcmask 908288   ;;  %vm236_vm1 = vcmask 1043456   ;;  %s747_s0 = inlined_call_operand.vmem [shape: f32[2,8,256], index: 0, kind: input, shape index: {}]   ;;  %s748_s3 = inlined_call_operand.vmem [shape: f32[8,1], index: 3, kind: input, shape index: {}]   ;;  %s749_s1 = inlined_call_operand.vmem [shape: bf16[8,256], index: 1, kind: input, shape index: {}]   ;;  %s750_s2 = inlined_call_operand.vmem [shape: bf16[8,72], index: 2, kind: input, shape index: {}]   ;;  %s751_s4 = inlined_call_operand.vmem [shape: f32[2,8,256], index: 4, kind: output, shape index: {}]  }
   0x1   :  { %v540_v0 = vld [vmem:[%s747_s0 + $0x10] sm:$0xff]  ;;  %v21_v1 = vld [vmem:[%s747_s0] sm:$0xff]  ;;  %v541_v2 = vld [vmem:[%s747_s0 + $0x18] sm:$0xff]  ;;  %s561_s25 = smov 127   ;;  %s562_s26 = smov 1   ;;  %316 = vmatprep.mubr.bf16.mxu0 %v565_v8  ;;  %518 = vmatprep.mubr.bf16.mxu1 %v565_v8  ;;  %vm180_vm2 = vcmask 916480  }
   0x2   :  { %v601_v3 = vpack.c.bf16 %v540_v0, %v540_v0  ;;  %v603_v4 = vpack.c.bf16 %v21_v1, %v21_v1  ;;  %v22_v5 = vld [vmem:[%s747_s0 + $0x8] sm:$0xff]  ;;  %v610_v6 = vpack.c.bf16 %v541_v2, %v541_v2  ;;  %s560_s0 = smov 113   ;;  %s563_s27 = smov 15   ;;  %555 = vset.pattern.permute.xlu0 %v565_v8  ;;  %v20_v9 = vld [vmem:[%s748_s3] sm:$0xff]  ;;  %v650_v14 = vshrl.u32 %v47_v12, 7 }
   0x3   :  { %v612_v7 = vpack.c.bf16 %v22_v5, %v22_v5  ;;  %s564_s28 = smov 16   ;;  %s566_s29 = smov 17   ;;  %v18_v10 = vld [vmem:[%s749_s1] sm:$0xff]  ;;  %vm158_vm3 = vcmask 924672   ;;  %vm136_vm4 = vcmask 1039360   ;;  %vm114_vm5 = vcmask 7168  }
   0x4   :  { %420 = vrot.lane.b32.xlu1 %v601_v3, %s558_s23  ;;  %198 = vrot.lane.b32.xlu0 %v603_v4, %s558_s23  ;;  %v537_v11 = vcombine.high %v18_v10, %v18_v10  ;;  %v536_v13 = vcombine.low %v18_v10, %v18_v10  ;;  %v190_v18 = vsub.s32 3, %v650_v14  ;;  %v146_v44 = vsub.s32 2, %v650_v14 }
   0x5   :  { %vm92_vm6 = vcmask 121856   ;;  %vm64_vm7 = vcmask 130048   ;;  %vm31_vm8 = vcmask 138240   ;;  %vm274_vm9 = vcmask 588800  }
   0x6   :  { %v79_v15 = vshrl.u32 %v537_v11, 16  ;;  %v72_v16 = vshrl.u32 %v536_v13, 16  ;;  %v659_v26 = vpack.i.b16 %v536_v13, %v536_v13  ;;  %v661_v27 = vpack.i.b16 %v537_v11, %v537_v11 }
   0x8   :  { %422 = vrot.lane.b32.xlu1 %v610_v6, %s558_s23  ;;  %200 = vrot.lane.b32.xlu0 %v612_v7, %s558_s23  ;;  %v652_v17 = vpack.i.b16 %v79_v15, %v79_v15  ;;  %v655_v19 = vpack.i.b16 %v72_v16, %v72_v16  ;;  %v191_v40 = vrot.slane %v659_v26, %v190_v18 }
   0x9   :  { %v195_v41 = vrot.slane %v661_v27, %v190_v18  ;;  %v151_v10 = vrot.slane %v661_v27, %v146_v44 }
   0xa   :  { %v217_v22 = vrot.slane %v652_v17, %v190_v18  ;;  %v213_v23 = vrot.slane %v655_v19, %v190_v18  ;;  %v169_v49 = vrot.slane %v655_v19, %v146_v44  ;;  %v173_v50 = vrot.slane %v652_v17, %v146_v44 }
   0xc   :  { %178 = vrot.lane.b32.xlu1 %v612_v7, %s559_s24  ;;  %176 = vrot.lane.b32.xlu0 %v603_v4, %s559_s24 }
  0x10   :  { %410 = vrot.lane.b32.xlu1 %v610_v6, %s559_s24  ;;  %408 = vrot.lane.b32.xlu0 %v601_v3, %s559_s24 }
  0x14   :  { %156 = vrot.lane.b32.xlu1 %v612_v7, %s560_s0  ;;  %154 = vrot.lane.b32.xlu0 %v603_v4, %s560_s0 }
  0x18   :  { %398 = vrot.lane.b32.xlu1 %v610_v6, %s560_s0  ;;  %396 = vrot.lane.b32.xlu0 %v601_v3, %s560_s0 }
  0x1c   :  { %134 = vrot.lane.b32.xlu1 %v612_v7, %s561_s25  ;;  %132 = vrot.lane.b32.xlu0 %v603_v4, %s561_s25 }
  0x20   :  { %386 = vrot.lane.b32.xlu1 %v610_v6, %s561_s25  ;;  %384 = vrot.lane.b32.xlu0 %v601_v3, %s561_s25 }
  0x24   :  { %112 = vrot.lane.b32.xlu1 %v603_v4, %s562_s26  ;;  %110 = vrot.lane.b32.xlu0 %v612_v7, %s562_s26 }
  0x28   :  { %374 = vrot.lane.b32.xlu1 %v601_v3, %s562_s26  ;;  %372 = vrot.lane.b32.xlu0 %v610_v6, %s562_s26 }
  0x2c   :  { %90 = vrot.lane.b32.xlu1 %v603_v4, %s563_s27  ;;  %88 = vrot.lane.b32.xlu0 %v612_v7, %s563_s27 }
  0x30   :  { %362 = vrot.lane.b32.xlu1 %v601_v3, %s563_s27  ;;  %360 = vrot.lane.b32.xlu0 %v610_v6, %s563_s27 }
  0x34   :  { %62 = vrot.lane.b32.xlu1 %v603_v4, %s564_s28  ;;  %60 = vrot.lane.b32.xlu0 %v612_v7, %s564_s28 }
  0x38   :  { %350 = vrot.lane.b32.xlu1 %v601_v3, %s564_s28  ;;  %348 = vrot.lane.b32.xlu0 %v610_v6, %s564_s28 }
  0x3c   :  { %29 = vrot.lane.b32.xlu1 %v603_v4, %s566_s29  ;;  %26 = vrot.lane.b32.xlu0 %v612_v7, %s566_s29 }
  0x40   :  { %338 = vrot.lane.b32.xlu1 %v601_v3, %s566_s29  ;;  %335 = vrot.lane.b32.xlu0 %v610_v6, %s566_s29 }
  0x44   :  { %271 = vperm.xlu0 %555, %v20_v9   ;;  %v147_v9 = vrot.slane %v659_v26, %v146_v44 }
  0x76   :  { %v421_v20 = vpop.permute.xlu1 %420  ;;  %v199_v21 = vpop.permute.xlu0 %198 }
  0x7a   :  { %v423_v24 = vpop.permute.xlu1 %422  ;;  %v201_v25 = vpop.permute.xlu0 %200 }
  0x7b   :  { %v424_v28 = vsel %vm202_vm0, %v421_v20, %v423_v24  ;;  %v428_v29 = vsel %vm202_vm0, %v423_v24, %v421_v20  ;;  %v203_v30 = vsel %vm202_vm0, %v199_v21, %v201_v25  ;;  %v208_v31 = vsel %vm202_vm0, %v201_v25, %v199_v21 }
  0x7c   :  { %v431_v32 = vmul.bf16 %v428_v29, %v217_v22  ;;  %v219_v33 = vmul.bf16 %v217_v22, %v208_v31  ;;  %v218_v34 = vmul.bf16 %v213_v23, %v203_v30  ;;  %v430_v35 = vmul.bf16 %v424_v28, %v213_v23 }
  0x7e   :  { %542 = vmatprep.subr.msk.bf16.mxu1 %vm236_vm1, %v431_v32  ;;  %v179_v36 = vpop.permute.xlu1 %178  ;;  %538 = vmatprep.subr.msk.bf16.mxu0 %vm236_vm1, %v219_v33  ;;  %v177_v37 = vpop.permute.xlu0 %176  ;;  %v279_v38 = vsel %vm236_vm1, %v218_v34, 0  ;;  %v481_v39 = vsel %vm236_vm1, %v430_v35, 0  ;;  %v102_v34 = vsub.s32 1, %v650_v14 }
  0x7f   :  { %291 = vmatpush1.bf16.msra.mxu0 %v279_v38  ;;  %493 = vmatpush1.bf16.msra.mxu1 %v481_v39  ;;  %v181_v42 = vsel %vm180_vm2, %v177_v37, %v179_v36  ;;  %v186_v43 = vsel %vm180_vm2, %v179_v36, %v177_v37 }
  0x80   :  { %v196_v47 = vmul.bf16 %v191_v40, %v181_v42  ;;  %v197_v48 = vmul.bf16 %v195_v41, %v186_v43  ;;  %v125_v43 = vrot.slane %v655_v19, %v102_v34  ;;  %v129_v44 = vrot.slane %v652_v17, %v102_v34 }
  0x82   :  { %v411_v45 = vpop.permute.xlu1 %410  ;;  %v409_v46 = vpop.permute.xlu0 %408  ;;  %v234_v55 = vrot.slane %v196_v47, 4  ;;  %v235_v56 = vrot.slane %v197_v48, 4 }
  0x83   :  { %v412_v51 = vsel %vm180_vm2, %v409_v46, %v411_v45  ;;  %v416_v52 = vsel %vm180_vm2, %v411_v45, %v409_v46 }
  0x84   :  { %v418_v59 = vmul.bf16 %v412_v51, %v191_v40  ;;  %v419_v60 = vmul.bf16 %v416_v52, %v195_v41  ;;  %v103_v51 = vrot.slane %v659_v26, %v102_v34  ;;  %v107_v52 = vrot.slane %v661_v27, %v102_v34 }
  0x86   :  { %v157_v53 = vpop.permute.xlu1 %156  ;;  %v155_v54 = vpop.permute.xlu0 %154  ;;  %v446_v11 = vrot.slane %v418_v59, 4  ;;  %v447_v12 = vrot.slane %v419_v60, 4 }
  0x87   :  { %v159_v57 = vsel %vm158_vm3, %v155_v54, %v157_v53  ;;  %v164_v58 = vsel %vm158_vm3, %v157_v53, %v155_v54 }
  0x88   :  { %v174_v61 = vmul.bf16 %v169_v49, %v159_v57  ;;  %v175_v62 = vmul.bf16 %v173_v50, %v164_v58 }
  0x8a   :  { %v399_v63 = vpop.permute.xlu1 %398  ;;  %v397_v0 = vpop.permute.xlu0 %396  ;;  %v267_v1 = vsel %vm236_vm1, %v175_v62, %v235_v56  ;;  %v263_v2 = vsel %vm236_vm1, %v174_v61, %v234_v55 }
  0x8b   :  { %v400_v5 = vsel %vm158_vm3, %v397_v0, %v399_v63  ;;  %v404_v8 = vsel %vm158_vm3, %v399_v63, %v397_v0  ;;  %292 = vmatprep.subr.bf16.mxu0 %v267_v1 }
  0x8c   :  { %v406_v13 = vmul.bf16 %v400_v5, %v169_v49  ;;  %v407_v15 = vmul.bf16 %v404_v8, %v173_v50  ;;  %293 = vmatpush1.bf16.msra.mxu0 %v263_v2 }
  0x8e   :  { %v135_v16 = vpop.permute.xlu1 %134  ;;  %v133_v18 = vpop.permute.xlu0 %132  ;;  %v478_v20 = vsel %vm236_vm1, %v407_v15, %v447_v12  ;;  %v474_v21 = vsel %vm236_vm1, %v406_v13, %v446_v11 }
  0x8f   :  { %v137_v22 = vsel %vm136_vm4, %v133_v18, %v135_v16  ;;  %v142_v23 = vsel %vm136_vm4, %v135_v16, %v133_v18  ;;  %494 = vmatprep.subr.bf16.mxu1 %v478_v20 }
  0x90   :  { %v152_v24 = vmul.bf16 %v147_v9, %v137_v22  ;;  %v153_v25 = vmul.bf16 %v151_v10, %v142_v23  ;;  %495 = vmatpush1.bf16.msra.mxu1 %v474_v21 }
  0x92   :  { %v230_v28 = vrot.slane %v152_v24, 4  ;;  %v231_v29 = vrot.slane %v153_v25, 4  ;;  %v387_v30 = vpop.permute.xlu1 %386  ;;  %v385_v31 = vpop.permute.xlu0 %384 }
  0x93   :  { %v388_v32 = vsel %vm136_vm4, %v385_v31, %v387_v30  ;;  %v392_v33 = vsel %vm136_vm4, %v387_v30, %v385_v31 }
  0x94   :  { %v394_v35 = vmul.bf16 %v388_v32, %v147_v9  ;;  %v395_v36 = vmul.bf16 %v392_v33, %v151_v10  ;;  %v259_v37 = vsel %vm236_vm1, %v612_v7, %v231_v29  ;;  %v255_v38 = vsel %vm236_vm1, %v603_v4, %v230_v28 }
  0x95   :  { %294 = vmatprep.subr.bf16.mxu0 %v259_v37  ;;  %v49_v9 = vsub.s32 0, %v650_v14 }
  0x96   :  { %v442_v39 = vrot.slane %v394_v35, 4  ;;  %v443_v40 = vrot.slane %v395_v36, 4  ;;  %v113_v41 = vpop.permute.xlu1 %112  ;;  %295 = vmatpush1.bf16.msra.mxu0 %v255_v38  ;;  %v111_v42 = vpop.permute.xlu0 %110 }
  0x97   :  { %v115_v45 = vsel %vm114_vm5, %v113_v41, %v111_v42  ;;  %v120_v46 = vsel %vm114_vm5, %v111_v42, %v113_v41  ;;  %v78_v21 = vrot.slane %v655_v19, %v49_v9  ;;  %v85_v22 = vrot.slane %v652_v17, %v49_v9 }
  0x98   :  { %v470_v7 = vsel %vm236_vm1, %v610_v6, %v443_v40  ;;  %v466_v4 = vsel %vm236_vm1, %v601_v3, %v442_v39  ;;  %v130_v49 = vmul.bf16 %v125_v43, %v120_v46  ;;  %v131_v50 = vmul.bf16 %v129_v44, %v115_v45 }
  0x99   :  { %496 = vmatprep.subr.bf16.mxu1 %v470_v7  ;;  %v50_v30 = vrot.slane %v659_v26, %v49_v9  ;;  %v57_v31 = vrot.slane %v661_v27, %v49_v9 }
  0x9a   :  { %v375_v47 = vpop.permute.xlu1 %374  ;;  %497 = vmatpush1.bf16.msra.mxu1 %v466_v4  ;;  %v373_v48 = vpop.permute.xlu0 %372  ;;  %v226_v56 = vrot.slane %v130_v49, 4  ;;  %v227_v57 = vrot.slane %v131_v50, 4 }
  0x9b   :  { %v376_v53 = vsel %vm114_vm5, %v375_v47, %v373_v48  ;;  %v380_v54 = vsel %vm114_vm5, %v373_v48, %v375_v47  ;;  %v19_v48 = vld [vmem:[%s750_s2] sm:$0xf] }
  0x9c   :  { %v382_v59 = vmul.bf16 %v380_v54, %v125_v43  ;;  %v383_v60 = vmul.bf16 %v376_v53, %v129_v44 }
  0x9e   :  { %v91_v55 = vpop.permute.xlu1 %90  ;;  %v89_v6 = vpop.permute.xlu0 %88  ;;  %v438_v10 = vrot.slane %v382_v59, 4  ;;  %v439_v11 = vrot.slane %v383_v60, 4 }
  0x9f   :  { %v93_v3 = vsel %vm92_vm6, %v91_v55, %v89_v6  ;;  %v98_v58 = vsel %vm92_vm6, %v89_v6, %v91_v55 }
  0xa0   :  { %v108_v61 = vmul.bf16 %v103_v51, %v98_v58  ;;  %v109_v62 = vmul.bf16 %v107_v52, %v93_v3 }
  0xa2   :  { %v363_v63 = vpop.permute.xlu1 %362  ;;  %v361_v0 = vpop.permute.xlu0 %360  ;;  %v251_v1 = vsel %vm236_vm1, %v109_v62, %v227_v57  ;;  %v247_v2 = vsel %vm236_vm1, %v108_v61, %v226_v56 }
  0xa3   :  { %v364_v5 = vsel %vm92_vm6, %v363_v63, %v361_v0  ;;  %v368_v8 = vsel %vm92_vm6, %v361_v0, %v363_v63  ;;  %296 = vmatprep.subr.bf16.mxu0 %v251_v1 }
  0xa4   :  { %v370_v12 = vmul.bf16 %v368_v8, %v103_v51  ;;  %v371_v13 = vmul.bf16 %v364_v5, %v107_v52  ;;  %297 = vmatpush1.bf16.msra.mxu0 %v247_v2 }
  0xa6   :  { %v63_v15 = vpop.permute.xlu1 %62  ;;  %v61_v16 = vpop.permute.xlu0 %60  ;;  %v462_v18 = vsel %vm236_vm1, %v371_v13, %v439_v11  ;;  %v458_v20 = vsel %vm236_vm1, %v370_v12, %v438_v10 }
  0xa7   :  { %498 = vmatprep.subr.bf16.mxu1 %v462_v18  ;;  %v65_v23 = vsel %vm64_vm7, %v63_v15, %v61_v16  ;;  %v70_v14 = vsel %vm64_vm7, %v61_v16, %v63_v15 }
  0xa8   :  { %499 = vmatpush1.bf16.msra.mxu1 %v458_v20  ;;  %v86_v28 = vmul.bf16 %v78_v21, %v70_v14  ;;  %v87_v29 = vmul.bf16 %v85_v22, %v65_v23 }
  0xaa   :  { %v351_v24 = vpop.permute.xlu1 %350  ;;  %v349_v25 = vpop.permute.xlu0 %348  ;;  %v222_v34 = vrot.slane %v86_v28, 4  ;;  %v223_v35 = vrot.slane %v87_v29, 4 }
  0xab   :  { %v352_v32 = vsel %vm64_vm7, %v351_v24, %v349_v25  ;;  %v356_v19 = vsel %vm64_vm7, %v349_v25, %v351_v24 }
  0xac   :  { %v358_v38 = vmul.bf16 %v356_v19, %v78_v21  ;;  %v359_v39 = vmul.bf16 %v352_v32, %v85_v22 }
  0xae   :  { %v30_v17 = vpop.permute.xlu1 %29  ;;  %v27_v33 = vpop.permute.xlu0 %26  ;;  %v434_v46 = vrot.slane %v358_v38, 4  ;;  %v435_v7 = vrot.slane %v359_v39, 4 }
  0xaf   :  { %v32_v36 = vsel %vm31_vm8, %v30_v17, %v27_v33  ;;  %v37_v37 = vsel %vm31_vm8, %v27_v33, %v30_v17 }
  0xb0   :  { %v58_v40 = vmul.bf16 %v50_v30, %v37_v37  ;;  %v59_v41 = vmul.bf16 %v57_v31, %v32_v36 }
  0xb2   :  { %v339_v42 = vpop.permute.xlu1 %338  ;;  %v336_v26 = vpop.permute.xlu0 %335  ;;  %v243_v27 = vsel %vm236_vm1, %v59_v41, %v223_v35  ;;  %v239_v43 = vsel %vm236_vm1, %v58_v40, %v222_v34 }
  0xb3   :  { %v340_v44 = vsel %vm31_vm8, %v339_v42, %v336_v26  ;;  %v344_v45 = vsel %vm31_vm8, %v336_v26, %v339_v42  ;;  %298 = vmatprep.subr.bf16.mxu0 %v243_v27 }
  0xb4   :  { %v346_v4 = vmul.bf16 %v344_v45, %v50_v30  ;;  %v347_v47 = vmul.bf16 %v340_v44, %v57_v31  ;;  %299 = vmatpush1.bf16.msra.mxu0 %v239_v43 }
  0xb6   :  { %v454_v49 = vsel %vm236_vm1, %v347_v47, %v435_v7  ;;  %v450_v50 = vsel %vm236_vm1, %v346_v4, %v434_v46 }
  0xb7   :  { %539 = vmatmul.mubr.msk.bf16.vlgmr.msra.gmra.mxu0 %vm274_vm9, %v19_v48  ;;  %500 = vmatprep.subr.bf16.mxu1 %v454_v49 }
  0xb8   :  { %501 = vmatpush1.bf16.msra.mxu1 %v450_v50 }
  0xbb   :  { %543 = vmatmul.mubr.msk.bf16.vlgmr.msra.gmra.mxu1 %vm274_vm9, %v19_v48 }
  0xbf   :  { %v272_v51 = vpop.permute.xlu0 %271 }
 0x177   :  { %v318_v52 = vpop.f32.mrf.mxu0 }
 0x178   :  { %v319_v53 = vadd.f32 %v318_v52, %v272_v51 }
 0x179   :  { %v320_v54 = vpop.f32.mrf.mxu0 }
 0x17a   :  { %v321_v55 = vadd.f32 %v320_v54, %v272_v51  ;;  %v325_v6 = vmax.f32 %v319_v53, 0.0 }
 0x17b   :  { %v322_v56 = vpop.f32.mrf.mxu0  ;;  %v520_v57 = vpop.f32.mrf.mxu1 }
 0x17c   :  { %v326_v3 = vmax.f32 %v321_v55, 0.0  ;;  %327 = vst [vmem:[%s751_s4] sm:$0xff] %v325_v6  ;;  %v521_v58 = vadd.f32 %v520_v57, %v272_v51 }
 0x17d   :  { %v323_v59 = vpop.f32.mrf.mxu0  ;;  %v522_v60 = vpop.f32.mrf.mxu1 }
 0x17e   :  { %328 = vst [vmem:[%s751_s4 + $0x8] sm:$0xff] %v326_v3  ;;  %v527_v61 = vmax.f32 %v521_v58, 0.0  ;;  %v523_v62 = vadd.f32 %v522_v60, %v272_v51 }
 0x17f   :  { %v524_v63 = vpop.f32.mrf.mxu1 }
 0x180   :  { %544 = vst [vmem:[%s751_s4 + $0x10] sm:$0xff] %v527_v61  ;;  %v528_v0 = vmax.f32 %v523_v62, 0.0 }
 0x181   :  { %v525_v1 = vpop.f32.mrf.mxu1 }
 0x182   :  { %545 = vst [vmem:[%s751_s4 + $0x18] sm:$0xff] %v528_v0 }

</bundles_post_ra>
